<compile_context>
chip_gen: v7x
topology: tpu7x:2x2x1
jax: 0.10.0
libtpu: 0.0.40
codegen_flags: <defaults>
</compile_context>

<pallas_src>
import functools

import jax
import jax.numpy as jnp
from jax.experimental import pallas as pl
from jax.experimental.pallas import tpu as pltpu

_LANE = 128
_NEG_BIG = -1e30


def _round_up(x, m):
    return ((x + m - 1) // m) * m


def _pad2(x, rows, cols):
    return jnp.pad(x, ((0, rows - x.shape[0]), (0, cols - x.shape[1])))


def _vmem_capacity_bytes():
    """Physical VMEM per TensorCore (128 MiB on v5e/v6e, 64 MiB on v7x)."""
    try:
        info = pltpu.get_tpu_info()
        for attr in ("vmem_capacity_bytes", "vmem_size_bytes", "vmem_bytes"):
            v = getattr(info, attr, None)
            if v:
                return int(v)
    except Exception:
        pass
    return 64 * 1024 * 1024  # conservative (v7x-sized) fallback


def _choose_block_rows(n_pad, granule, fits, tm_max=512):
    """Largest row tile that is a multiple of `granule`, divides the
    lane-aligned n_pad, and whose per-step VMEM footprint fits the budget."""
    tm = min(n_pad, tm_max)
    tm = max(granule, (tm // granule) * granule)
    while tm > granule and (n_pad % tm != 0 or not fits(tm)):
        tm -= granule
    return tm


def _masked_log_softmax(x, n_class):
    """log_softmax over axis=1 where only the first n_class columns are real."""
    col = jax.lax.broadcasted_iota(jnp.int32, x.shape, 1)
    xm = jnp.where(col < n_class, x, _NEG_BIG)
    m = jnp.max(xm, axis=1, keepdims=True)
    z = xm - m
    lse = jnp.log(jnp.sum(jnp.exp(z), axis=1, keepdims=True))
    return z - lse


def _gate(x, aw_row, ab):
    """sigmoid(x . alpha_w + alpha_b) * x, with a lane-dense (1, C_pad) alpha
    row and a VPU/XLU row-reduce (no 1-column MXU matmul)."""
    logit = jnp.sum(x * aw_row, axis=1, keepdims=True) + ab
    return jax.nn.sigmoid(logit) * x


def dagnn_mlp_kernel(feat_ref, w1_ref, b1_ref, w2_ref, b2_ref, aw_ref, ab_ref,
                     *out_refs, n_class, finalize):
    """lin1 + relu + lin2 + hop-0 gating for one (TM, .) row block."""
    h = jnp.dot(feat_ref[...], w1_ref[...], preferred_element_type=jnp.float32)
    h = jnp.maximum(h + b1_ref[...], 0.0)
    x0 = jnp.dot(h, w2_ref[...], preferred_element_type=jnp.float32) + b2_ref[...]
    acc = _gate(x0, aw_ref[...], ab_ref[0, 0])
    if finalize:                       # k == 0: x0 is dead, only acc is emitted
        acc_ref, = out_refs
        acc_ref[...] = _masked_log_softmax(acc, n_class)
    else:
        x0_ref, acc_ref = out_refs
        x0_ref[...] = x0.astype(x0_ref.dtype)
        acc_ref[...] = acc


def dagnn_hop_kernel(*refs, n_class, finalize, has_scale):
    """One propagation hop + fused gating for one (TM, .) row block."""
    idx = 0
    adj_ref = refs[idx]; idx += 1
    scale_ref = None
    if has_scale:
        scale_ref = refs[idx]; idx += 1
    xprev_ref, accin_ref, aw_ref, ab_ref = refs[idx:idx + 4]
    out_refs = refs[idx + 4:]

    a = adj_ref[...]
    if a.dtype == jnp.int8:
        # Dequant cast is VPU work hidden under the adj DMA.
        a = a.astype(jnp.float32)
    # x_new[rows] = adj[rows, :] @ x_prev   (adj streamed, x_prev resident)
    x_new = jnp.dot(a, xprev_ref[...], preferred_element_type=jnp.float32)
    if scale_ref is not None:
        x_new = x_new * scale_ref[...]          # per-row dequant scale
    # fused adaptive-gating accumulation (no xs list materialised).
    acc = accin_ref[...] + _gate(x_new, aw_ref[...], ab_ref[0, 0])
    if finalize:                                # last hop: x_new is dead
        acc_ref, = out_refs
        acc_ref[...] = _masked_log_softmax(acc, n_class)
    else:
        xnew_ref, acc_ref = out_refs
        xnew_ref[...] = x_new.astype(xnew_ref.dtype)
        acc_ref[...] = acc


def dagnn_forward(feature, adj, w1, b1, w2, b2, alpha_w, alpha_b, *, k,
                  precision="bf16", block_rows=None):
    """DAGNN forward (eval mode).  Returns (N, C) log-probabilities.

    precision: "f32"  -> adj f32,  x f32
               "bf16" -> adj bf16, x bf16 (f32 MXU accumulation / f32 gating)
               "int8" -> adj int8 + per-row f32 scale, x carried in f32
    """
    assert precision in ("f32", "bf16", "int8")
    n, f = feature.shape
    h_dim = w1.shape[1]
    c = w2.shape[1]

    if precision == "bf16":
        adj_dtype, x_dtype, granule = jnp.bfloat16, jnp.bfloat16, 16
    elif precision == "int8":
        adj_dtype, x_dtype, granule = jnp.int8, jnp.float32, 32
    else:
        adj_dtype, x_dtype, granule = jnp.float32, jnp.float32, 8
    adj_bytes = jnp.dtype(adj_dtype).itemsize
    x_bytes = jnp.dtype(x_dtype).itemsize
    has_scale = precision == "int8"

    f_pad = _round_up(f, _LANE)
    h_pad = _round_up(h_dim, _LANE)
    c_pad = _round_up(c, _LANE)
    n_pad = _round_up(n, _LANE)       # lane-aligned last dim for adj / x_prev

    # --- VMEM budget: count everything resident per grid step ---------------
    vmem_cap = _vmem_capacity_bytes()
    vmem_limit = min((vmem_cap * 3) // 4, 100 * 1024 * 1024)
    budget = vmem_limit - 2 * 1024 * 1024      # headroom for compiler scratch

    def _fits(tm):
        hop = (2 * tm * n_pad * adj_bytes          # adj stream (double-buffered)
               + 2 * n_pad * c_pad * x_bytes       # resident x_prev (2 buffers)
               + 2 * tm * c_pad * 4                # acc-in stream
               + 2 * tm * c_pad * (x_bytes + 4)    # x_new + acc-out streams
               + 4 * c_pad * 4)                    # alpha row
        if has_scale:
            hop += 2 * tm * _LANE * 4              # (tm,1) scale tiles
        mlp = (2 * tm * f_pad * 4                  # feature stream
               + 2 * f_pad * h_pad * 4             # W1 resident
               + 2 * h_pad * c_pad * 4             # W2 resident
               + 2 * tm * c_pad * (x_bytes + 4)    # x0 + acc streams
               + 4 * (h_pad + 2 * c_pad) * 4)      # b1, b2, alpha row
        return max(hop, mlp) <= budget

    if block_rows is not None:
        tm = max(granule, _round_up(block_rows, granule))
        n_pad = _round_up(n_pad, tm)
    else:
        tm = _choose_block_rows(n_pad, granule, _fits)
    n_tiles = n_pad // tm

    # --- lane-dense zero padding (padded rows/cols contribute nothing) ------
    feat_p = _pad2(feature.astype(jnp.float32), n_pad, f_pad)
    w1_p = _pad2(w1.astype(jnp.float32), f_pad, h_pad)
    b1_p = _pad2(b1.reshape(1, -1).astype(jnp.float32), 1, h_pad)
    w2_p = _pad2(w2.astype(jnp.float32), h_pad, c_pad)
    b2_p = _pad2(b2.reshape(1, -1).astype(jnp.float32), 1, c_pad)
    aw_p = _pad2(alpha_w.reshape(1, -1).astype(jnp.float32), 1, c_pad)
    ab_s = alpha_b.reshape(1, 1).astype(jnp.float32)

    adj_f = _pad2(adj.astype(jnp.float32), n_pad, n_pad)
    if has_scale:
        row_amax = jnp.max(jnp.abs(adj_f), axis=1, keepdims=True)
        scale_p = jnp.where(row_amax > 0, row_amax / 127.0, 1.0)      # (n_pad,1)
        adj_p = jnp.clip(jnp.round(adj_f / scale_p), -127, 127).astype(jnp.int8)
    else:
        scale_p = None
        adj_p = adj_f.astype(adj_dtype)

    cparams = pltpu.CompilerParams(
        dimension_semantics=("parallel",),
        vmem_limit_bytes=int(vmem_limit))

    def row_spec(cols):
        return pl.BlockSpec((tm, cols), lambda i: (i, 0))

    def const_spec(rows, cols):
        return pl.BlockSpec((rows, cols), lambda i: (0, 0))

    # --- stage 1: MLP (lin1+relu, lin2) + hop-0 gating ----------------------
    finalize0 = (k == 0)
    mlp_cost = pl.CostEstimate(
        flops=2 * n_pad * (f_pad * h_pad + h_pad * c_pad + c_pad),
        transcendentals=n_pad,
        bytes_accessed=(4 * (n_pad * f_pad + f_pad * h_pad + h_pad * c_pad)
                        + n_pad * c_pad * (x_bytes + 4)))
    if finalize0:
        mlp_out_shape = (jax.ShapeDtypeStruct((n_pad, c_pad), jnp.float32),)
        mlp_out_specs = (row_spec(c_pad),)
    else:
        mlp_out_shape = (jax.ShapeDtypeStruct((n_pad, c_pad), x_dtype),
                         jax.ShapeDtypeStruct((n_pad, c_pad), jnp.float32))
        mlp_out_specs = (row_spec(c_pad), row_spec(c_pad))

    mlp_outs = pl.pallas_call(
        functools.partial(dagnn_mlp_kernel, n_class=c, finalize=finalize0),
        out_shape=mlp_out_shape,
        grid_spec=pl.GridSpec(
            grid=(n_tiles,),
            in_specs=[
                row_spec(f_pad),                 # feature rows (streamed)
                const_spec(f_pad, h_pad),        # W1
                const_spec(1, h_pad),            # b1
                const_spec(h_pad, c_pad),        # W2
                const_spec(1, c_pad),            # b2
                const_spec(1, c_pad),            # alpha row (lane-dense)
                pl.BlockSpec(memory_space=pltpu.MemorySpace.SMEM),  # alpha bias
            ],
            out_specs=mlp_out_specs,
        ),
        compiler_params=cparams,
        cost_estimate=mlp_cost,
    )(feat_p, w1_p, b1_p, w2_p, b2_p, aw_p, ab_s)

    if finalize0:
        acc, = mlp_outs
        return acc[:n, :c]
    x, acc = mlp_outs

    # --- stage 2: k hops of adj @ x with fused gating ------------------------
    hop_cost = pl.CostEstimate(
        flops=2 * n_pad * n_pad * c_pad + 6 * n_pad * c_pad,
        transcendentals=n_pad,
        bytes_accessed=(n_pad * n_pad * adj_bytes
                        + n_pad * c_pad * x_bytes
                        + n_pad * c_pad * 4
                        + n_pad * c_pad * (x_bytes + 4)))
    for hop in range(k):
        finalize = hop == k - 1
        inputs = [adj_p]
        in_specs = [row_spec(n_pad)]                       # adj rows (streamed)
        if has_scale:
            inputs.append(scale_p)
            in_specs.append(row_spec(1))                   # per-row dequant scale
        inputs += [x, acc, aw_p, ab_s]
        in_specs += [
            const_spec(n_pad, c_pad),                      # x_prev (VMEM-resident)
            row_spec(c_pad),                               # gating accumulator in
            const_spec(1, c_pad),                          # alpha row
            pl.BlockSpec(memory_space=pltpu.MemorySpace.SMEM),  # alpha bias
        ]
        acc_in_idx = len(inputs) - 3                       # position of `acc`
        if finalize:                                       # drop dead x output
            out_shape = (jax.ShapeDtypeStruct((n_pad, c_pad), jnp.float32),)
            out_specs = (row_spec(c_pad),)
            aliases = {acc_in_idx: 0}
        else:
            out_shape = (jax.ShapeDtypeStruct((n_pad, c_pad), x_dtype),
                         jax.ShapeDtypeStruct((n_pad, c_pad), jnp.float32))
            out_specs = (row_spec(c_pad), row_spec(c_pad))
            aliases = {acc_in_idx: 1}

        outs = pl.pallas_call(
            functools.partial(dagnn_hop_kernel, n_class=c,
                              finalize=finalize, has_scale=has_scale),
            out_shape=out_shape,
            grid_spec=pl.GridSpec(grid=(n_tiles,), in_specs=in_specs,
                                  out_specs=out_specs),
            compiler_params=cparams,
            cost_estimate=hop_cost,
            input_output_aliases=aliases,                  # acc updated in place
        )(*inputs)
        if finalize:
            acc, = outs
        else:
            x, acc = outs

    return acc[:n, :c]


def dagnn_reference(feature, adj, w1, b1, w2, b2, alpha_w, alpha_b, *, k):
    """Pure-JAX reference mirroring the PyTorch forward (eval mode)."""
    x = jax.nn.relu(feature @ w1 + b1)
    x = x @ w2 + b2
    xs = [x]
    for _ in range(k):
        x = adj @ x
        xs.append(x)
    xs = jnp.stack(xs, axis=1)                                     # (N, k+1, C)
    score = jax.nn.sigmoid(xs @ alpha_w.reshape(-1, 1) + alpha_b)  # (N, k+1, 1)
    score = jnp.squeeze(score, -1)[:, None, :]                     # (N, 1, k+1)
    out = jnp.squeeze(score @ xs, 1)                               # (N, C)
    return jax.nn.log_softmax(out, axis=1)


if __name__ == "__main__":
    # N nodes, F features, H hidden, C classes, K hops.  Non-multiples of 128
    # on purpose to exercise the lane/row padding paths; block_rows=128
    # exercises a multi-step "parallel" row-tile grid.
    N, F, H, C, K = 300, 96, 64, 10, 3

    key = jax.random.PRNGKey(0)
    kf, ka, k1, kb1, k2, kb2, kaw, kab = jax.random.split(key, 8)

    feature = jax.random.normal(kf, (N, F), dtype=jnp.float32)

    # synthetic row-normalized dense adjacency (stands in for the Laplacian)
    a = jax.random.uniform(ka, (N, N), dtype=jnp.float32)
    a = (a > 0.8).astype(jnp.float32) + jnp.eye(N, dtype=jnp.float32)
    adj = a / jnp.sum(a, axis=1, keepdims=True)

    # deterministic "Linear"-style parameters (stored as (in, out))
    w1 = jax.random.normal(k1, (F, H), dtype=jnp.float32) * (1.0 / jnp.sqrt(F))
    b1 = jax.random.normal(kb1, (H,), dtype=jnp.float32) * 0.1
    w2 = jax.random.normal(k2, (H, C), dtype=jnp.float32) * (1.0 / jnp.sqrt(H))
    b2 = jax.random.normal(kb2, (C,), dtype=jnp.float32) * 0.1
    alpha_w = jax.random.normal(kaw, (C,), dtype=jnp.float32) * (1.0 / jnp.sqrt(C))
    alpha_b = jax.random.normal(kab, (1,), dtype=jnp.float32) * 0.1

    ref = dagnn_reference(feature, adj, w1, b1, w2, b2, alpha_w, alpha_b, k=K)

    # f32 path, explicit multi-tile grid: tight correctness check.
    out_f32 = dagnn_forward(feature, adj, w1, b1, w2, b2, alpha_w, alpha_b,
                            k=K, precision="f32", block_rows=128)
    out_f32 = jax.block_until_ready(out_f32)
    assert out_f32.shape == (N, C)
    assert jnp.allclose(out_f32, ref, atol=1e-3, rtol=1e-3), "f32 mismatch vs reference"

    # bf16 fast path with the auto VMEM-budgeted row tile: loose tolerance.
    out_bf16 = dagnn_forward(feature, adj, w1, b1, w2, b2, alpha_w, alpha_b,
                             k=K, precision="bf16")
    out_bf16 = jax.block_until_ready(out_bf16)
    assert out_bf16.shape == (N, C)
    assert jnp.allclose(out_bf16, ref, atol=5e-2, rtol=5e-2), "bf16 mismatch vs reference"

    # int8-adj path (halves/quarters the dominant HBM stream on v5e/v6e),
    # x carried in f32; row-normalized adj quantizes essentially exactly here.
    out_i8 = dagnn_forward(feature, adj, w1, b1, w2, b2, alpha_w, alpha_b,
                           k=K, precision="int8")
    out_i8 = jax.block_until_ready(out_i8)
    assert out_i8.shape == (N, C)
    assert jnp.allclose(out_i8, ref, atol=2e-2, rtol=2e-2), "int8 mismatch vs reference"

    # k == 0 path: MLP-only finalize variant (no dead x0 output).
    ref0 = dagnn_reference(feature, adj, w1, b1, w2, b2, alpha_w, alpha_b, k=0)
    out0 = dagnn_forward(feature, adj, w1, b1, w2, b2, alpha_w, alpha_b,
                         k=0, precision="f32", block_rows=128)
    out0 = jax.block_until_ready(out0)
    assert out0.shape == (N, C)
    assert jnp.allclose(out0, ref0, atol=1e-3, rtol=1e-3), "k=0 mismatch vs reference"

    print("KERNEL_OK")
</pallas_src>

<mosaic_0001>
module attributes {stable_mosaic.version = 11 : i64} {
  func.func @dagnn_mlp_kernel(%arg0: i32, %arg1: memref<128x128xf32, #tpu.memory_space<vmem>>, %arg2: memref<128x128xf32, #tpu.memory_space<vmem>>, %arg3: memref<1x128xf32, #tpu.memory_space<vmem>>, %arg4: memref<128x128xf32, #tpu.memory_space<vmem>>, %arg5: memref<1x128xf32, #tpu.memory_space<vmem>>, %arg6: memref<1x128xf32, #tpu.memory_space<vmem>>, %arg7: memref<1x1xf32, #tpu.memory_space<smem>>, %arg8: memref<128x128xf32, #tpu.memory_space<vmem>>, %arg9: memref<128x128xf32, #tpu.memory_space<vmem>>) attributes {dimension_semantics = [#tpu.dimension_semantics<parallel>], iteration_bounds = array<i64: 3>, scalar_prefetch = 0 : i64, scratch_operands = 0 : i64, tpu.core_type = #tpu.core_type<tc>, window_params = [{transform_indices = @transform_0, window_bounds = array<i64: 128, 128>}, {pipeline_mode = #tpu.pipeline_mode<synchronous>, transform_indices = @transform_1, window_bounds = array<i64: 128, 128>}, {pipeline_mode = #tpu.pipeline_mode<synchronous>, transform_indices = @transform_2, window_bounds = array<i64: 1, 128>}, {pipeline_mode = #tpu.pipeline_mode<synchronous>, transform_indices = @transform_3, window_bounds = array<i64: 128, 128>}, {pipeline_mode = #tpu.pipeline_mode<synchronous>, transform_indices = @transform_4, window_bounds = array<i64: 1, 128>}, {pipeline_mode = #tpu.pipeline_mode<synchronous>, transform_indices = @transform_5, window_bounds = array<i64: 1, 128>}, {transform_indices = @transform_6, window_bounds = array<i64: 1, 1>}, {transform_indices = @transform_7, window_bounds = array<i64: 128, 128>}, {transform_indices = @transform_8, window_bounds = array<i64: 128, 128>}]} {
    %c0 = arith.constant 0 : index
    %c0_0 = arith.constant 0 : index
    %0 = vector.load %arg1[%c0, %c0_0] : memref<128x128xf32, #tpu.memory_space<vmem>>, vector<128x128xf32>
    %c0_1 = arith.constant 0 : index
    %c0_2 = arith.constant 0 : index
    %1 = vector.load %arg2[%c0_1, %c0_2] : memref<128x128xf32, #tpu.memory_space<vmem>>, vector<128x128xf32>
    %cst = arith.constant dense<0.000000e+00> : vector<128x128xf32>
    %2 = tpu.matmul %0, %1, %cst {dimension_numbers = #tpu.dot_dimension_numbers<[1], [0], [0], [1], [0, 0, 1, 1], [], []>} : vector<128x128xf32>, vector<128x128xf32>, vector<128x128xf32> -> vector<128x128xf32>
    %c0_3 = arith.constant 0 : index
    %c0_4 = arith.constant 0 : index
    %3 = vector.load %arg3[%c0_3, %c0_4] : memref<1x128xf32, #tpu.memory_space<vmem>>, vector<1x128xf32>
    %4 = vector.broadcast %3 : vector<1x128xf32> to vector<128x128xf32>
    %5 = arith.addf %2, %4 : vector<128x128xf32>
    %cst_5 = arith.constant 0.000000e+00 : f32
    %6 = vector.broadcast %cst_5 : f32 to vector<128x128xf32>
    %7 = arith.maximumf %5, %6 : vector<128x128xf32>
    %c0_6 = arith.constant 0 : index
    %c0_7 = arith.constant 0 : index
    %8 = vector.load %arg4[%c0_6, %c0_7] : memref<128x128xf32, #tpu.memory_space<vmem>>, vector<128x128xf32>
    %cst_8 = arith.constant dense<0.000000e+00> : vector<128x128xf32>
    %9 = tpu.matmul %7, %8, %cst_8 {dimension_numbers = #tpu.dot_dimension_numbers<[1], [0], [0], [1], [0, 0, 1, 1], [], []>} : vector<128x128xf32>, vector<128x128xf32>, vector<128x128xf32> -> vector<128x128xf32>
    %c0_9 = arith.constant 0 : index
    %c0_10 = arith.constant 0 : index
    %10 = vector.load %arg5[%c0_9, %c0_10] : memref<1x128xf32, #tpu.memory_space<vmem>>, vector<1x128xf32>
    %11 = vector.broadcast %10 : vector<1x128xf32> to vector<128x128xf32>
    %12 = arith.addf %9, %11 : vector<128x128xf32>
    %c0_11 = arith.constant 0 : index
    %c0_12 = arith.constant 0 : index
    %13 = vector.load %arg6[%c0_11, %c0_12] : memref<1x128xf32, #tpu.memory_space<vmem>>, vector<1x128xf32>
    %c0_13 = arith.constant 0 : index
    %c0_14 = arith.constant 0 : index
    %14 = memref.load %arg7[%c0_13, %c0_14] : memref<1x1xf32, #tpu.memory_space<smem>>
    %15 = vector.broadcast %13 : vector<1x128xf32> to vector<128x128xf32>
    %16 = arith.mulf %12, %15 : vector<128x128xf32>
    %cst_15 = arith.constant dense<0.000000e+00> : vector<128xf32>
    %17 = vector.multi_reduction <add>, %16, %cst_15 [1] : vector<128x128xf32> to vector<128xf32>
    %18 = vector.shape_cast %17 : vector<128xf32> to vector<128x1xf32>
    %19 = vector.broadcast %14 : f32 to vector<128x1xf32>
    %20 = arith.addf %18, %19 : vector<128x1xf32>
    %21 = arith.negf %20 : vector<128x1xf32>
    %22 = math.exp %21 : vector<128x1xf32>
    %cst_16 = arith.constant 1.000000e+00 : f32
    %23 = vector.broadcast %cst_16 : f32 to vector<128x1xf32>
    %24 = arith.addf %23, %22 : vector<128x1xf32>
    %25 = arith.divf %23, %24 : vector<128x1xf32>
    %26 = vector.broadcast %25 : vector<128x1xf32> to vector<128x128xf32>
    %27 = arith.mulf %26, %12 : vector<128x128xf32>
    %c0_17 = arith.constant 0 : index
    %c0_18 = arith.constant 0 : index
    %28 = vector.load %arg8[%c0_17, %c0_18] : memref<128x128xf32, #tpu.memory_space<vmem>>, vector<128x128xf32>
    tpu.vector_store %arg8[%c0_17, %c0_18], %12 {strides = array<i32>} : memref<128x128xf32, #tpu.memory_space<vmem>>, vector<128x128xf32>,
    %c0_19 = arith.constant 0 : index
    %c0_20 = arith.constant 0 : index
    %29 = vector.load %arg9[%c0_19, %c0_20] : memref<128x128xf32, #tpu.memory_space<vmem>>, vector<128x128xf32>
    tpu.vector_store %arg9[%c0_19, %c0_20], %27 {strides = array<i32>} : memref<128x128xf32, #tpu.memory_space<vmem>>, vector<128x128xf32>,
    return
  }
  func.func @transform_0(%arg0: i32) -> (i32, i32) {
    %c0_i32 = arith.constant 0 : i32
    %c0_i32_0 = arith.constant 0 : i32
    return %arg0, %c0_i32 : i32, i32
  }
  func.func @transform_1(%arg0: i32) -> (i32, i32) {
    %c0_i32 = arith.constant 0 : i32
    %c0_i32_0 = arith.constant 0 : i32
    %c0_i32_1 = arith.constant 0 : i32
    return %c0_i32, %c0_i32_0 : i32, i32
  }
  func.func @transform_2(%arg0: i32) -> (i32, i32) {
    %c0_i32 = arith.constant 0 : i32
    %c0_i32_0 = arith.constant 0 : i32
    %c0_i32_1 = arith.constant 0 : i32
    return %c0_i32, %c0_i32_0 : i32, i32
  }
  func.func @transform_3(%arg0: i32) -> (i32, i32) {
    %c0_i32 = arith.constant 0 : i32
    %c0_i32_0 = arith.constant 0 : i32
    %c0_i32_1 = arith.constant 0 : i32
    return %c0_i32, %c0_i32_0 : i32, i32
  }
  func.func @transform_4(%arg0: i32) -> (i32, i32) {
    %c0_i32 = arith.constant 0 : i32
    %c0_i32_0 = arith.constant 0 : i32
    %c0_i32_1 = arith.constant 0 : i32
    return %c0_i32, %c0_i32_0 : i32, i32
  }
  func.func @transform_5(%arg0: i32) -> (i32, i32) {
    %c0_i32 = arith.constant 0 : i32
    %c0_i32_0 = arith.constant 0 : i32
    %c0_i32_1 = arith.constant 0 : i32
    return %c0_i32, %c0_i32_0 : i32, i32
  }
  func.func @transform_6(%arg0: i32) -> (i32, i32) {
    %c0_i32 = arith.constant 0 : i32
    %c0_i32_0 = arith.constant 0 : i32
    %c0_i32_1 = arith.constant 0 : i32
    return %c0_i32, %c0_i32_0 : i32, i32
  }
  func.func @transform_7(%arg0: i32) -> (i32, i32) {
    %c0_i32 = arith.constant 0 : i32
    %c0_i32_0 = arith.constant 0 : i32
    return %arg0, %c0_i32 : i32, i32
  }
  func.func @transform_8(%arg0: i32) -> (i32, i32) {
    %c0_i32 = arith.constant 0 : i32
    %c0_i32_0 = arith.constant 0 : i32
    return %arg0, %c0_i32 : i32, i32
  }
}

</mosaic_0001>

<bundles_post_ra>
// kernel: tpu_custom_call.1
= control target key start
LH: loop header
LB: loop body
LE: loop exit
PB: predicated region body
PF: predicated region fallthrough
CT: control target
= control target key end

     0   :  { %s2262_s0 = inlined_call_operand.hbm [shape: f32[384,128], index: 0, kind: input, shape index: {}]   ;;  %s2263_s1 = inlined_call_operand.hbm [shape: f32[128,128], index: 1, kind: input, shape index: {}]   ;;  %s2264_s2 = inlined_call_operand.vmem [shape: f32[1,128], index: 2, kind: input, shape index: {}]   ;;  %s2265_s3 = inlined_call_operand.hbm [shape: f32[128,128], index: 3, kind: input, shape index: {}]   ;;  %s2266_s4 = inlined_call_operand.vmem [shape: f32[1,128], index: 4, kind: input, shape index: {}]   ;;  %s2267_s5 = inlined_call_operand.vmem [shape: f32[1,128], index: 5, kind: input, shape index: {}]   ;;  %s2268_s6 = inlined_call_operand.<no memory space> [shape: f32[1,1], index: 6, kind: input, shape index: {}]   ;;  %s2269_s7 = inlined_call_operand.hbm [shape: f32[384,128], index: 7, kind: output, shape index: {0}]   ;;  %s2270_s8 = inlined_call_operand.hbm [shape: f32[384,128], index: 8, kind: output, shape index: {1}]  }
   0x1   :  { %14 = sst [smem:[#allocation2]] %s2268_s6 }
   0x2   :  { %15 = vsyncpa [#allocation4], 0 }
   0x3   :  { %17 = vsyncpa [#allocation4 + $0x1], 0 }
   0x4   :  { %18 = vsyncpa [#allocation7], 0 }
   0x5   :  { %19 = vsyncpa [#allocation5], 0 }
   0x6   :  { %21 = vsyncpa [#allocation5 + $0x1], 0 }
   0x7   :  { %22 = vsyncpa [#allocation11], 0 }
   0x8   :  { %24 = vsyncpa [#allocation11 + $0x1], 0  ;;  %s1783_s29 = smov 0   ;;  %s1785_s30 = smov 0  }
   0x9   :  { %s1787_s9 = smov 0   ;;  %s1789_s10 = smov 0  }
   0xa LB: > { %s1804_s6 = sadd.s32 4294967295, %s1724_s10   ;;  %s1112_s11 = sadd.s32 4294967294, %s1724_s10   ;;  %s1724_s10 = sphi %s1789_s10, %s2291_s10   ;;  %s1720_s9 = sphi %s1787_s9, %s2290_s9   ;;  %s1716_s30 = sphi %s1785_s30, %s2289_s30   ;;  %s1712_s29 = sphi %s1783_s29, %s2288_s29  }
   0xb   : > { %p50_p0 = scmp.ne.s32.totalorder %s1716_s30, %s1712_s29  ;;  %p2271_p1 = scmp.eq.s32.totalorder %s1804_s6, 0 }
   0xc   : > { %p206_p3 = scmp.eq.s32.totalorder %s1112_s11, 2  ;;  %p1113_p5 = scmp.ge.s32.totalorder %s1724_s10, 1 }
   0xd   : > { %p1813_p4 = por %p2271_p1, %p50_p0  ;;  %p239_p7 = scmp.lt.s32.totalorder %s1724_s10, 4 }
   0xe   : > { %p1818_p6 = por %p206_p3, %p50_p0  ;;  %s1726_s15 = smov [#allocation6]  }
   0xf   : > { %s2275_s12 = scalar_select %p1813_p4, 1, 0 }
  0x10   : > { %s2276_s13 = scalar_select %p1818_p6, 1, 0 }
  0x11   : > { %p1823_p8 = pnand %p1113_p5, %p239_p7  ;;  %s251_s16 = sshll.u32 %s1726_s15, 4  ;;  %s252_s16 = int_to_ptr.vmem [resolvable:$true] %s251_s16 }
  0x12   : > { %s1727_s18 = smov [#allocation8]   ;;  %s1536_s22 = scalar_lea.hbm %s2263_s1, 2048 }
  0x13   : > { %s2277_s14 = scalar_select %p1823_p8, 1, 0 }
  0x14   : > { %p1410_p9 = pneg %p1823_p8  ;;  %s267_s19 = sshll.u32 %s1727_s18, 4  ;;  %s1835_s19 = int_to_ptr.vmem [resolvable:$true] %s267_s19 }
  0x15   : > { %p1537_p11 = scmp.ne.s32.totalorder %s2263_s1, %s1536_s22  ;;  %p1543_p3 = scmp.lt.u32.totalorder %s1536_s22, %s2263_s1 }
  0x16   : > { %p1831_p10 = pnand %p1410_p9, %p2271_p1 }
  0x18   : > { %p1538_p12 = pneg %p1831_p10 }
  0x1a   : > { %p1539_p13 = pnand %p1538_p12, %p1537_p11 }
  0x1c   : > { %p1540_p0 = pneg %p1539_p13 }
  0x1e   : > { %p1545_p5 = pnand %p1543_p3, %p1540_p0 }
  0x20   : > { %1548 = shalt.err (!%p1545_p5)
}
  0x21   : > { %s1549_s27 = scalar_lea.vmem %s252_s16, 2048  ;;  %p1557_p2 = scmp.lt.s32.totalorder %s252_s16, %s252_s16 }
  0x22   : > { %p1550_p7 = scmp.ne.s32.totalorder %s252_s16, %s1549_s27  ;;  %p1558_p6 = scmp.lt.s32.totalorder %s1549_s27, %s1549_s27 }
  0x24   : > { %p1552_p9 = pnand %p1550_p7, %p1538_p12  ;;  %p1559_p4 = por %p1558_p6, %p1557_p2 }
  0x26   : > { %p1553_p1 = pneg %p1552_p9 }
  0x28   : > { %p1560_p8 = pnand %p1559_p4, %p1553_p1 }
  0x2a   : > { %1563 = shalt.err (!%p1560_p8)
}
  0x2b   : > { %s2274_s28 = smov 128   ;;  %s1729_s11 = smov 8  }
  0x2c   : > { %1413 = dma.hbm_to_vmem [thread:$0]  (!%p1831_p10), %s2263_s1, 2048, %s252_s16, [#allocation7], %s2274_s28, %s2274_s28, %s1729_s11  }
  0x2d   : > { %s1564_s22 = scalar_lea.hbm %s2265_s3, 2048 }
  0x2e   : > { %p1565_p1 = scmp.ne.s32.totalorder %s2265_s3, %s1564_s22  ;;  %p1571_p6 = scmp.lt.u32.totalorder %s1564_s22, %s2265_s3 }
  0x30   : > { %p1567_p2 = pnand %p1565_p1, %p1538_p12 }
  0x32   : > { %p1568_p4 = pneg %p1567_p2 }
  0x34   : > { %p1573_p8 = pnand %p1571_p6, %p1568_p4 }
  0x36   : > { %1576 = shalt.err (!%p1573_p8)
}
  0x37   : > { %s1577_s16 = scalar_lea.vmem %s1835_s19, 2048  ;;  %p1585_p3 = scmp.lt.s32.totalorder %s1835_s19, %s1835_s19 }
  0x38   : > { %p1578_p11 = scmp.ne.s32.totalorder %s1835_s19, %s1577_s16  ;;  %p1586_p5 = scmp.lt.s32.totalorder %s1577_s16, %s1577_s16 }
  0x3a   : > { %p1580_p13 = pnand %p1578_p11, %p1538_p12  ;;  %p1587_p7 = por %p1586_p5, %p1585_p3 }
  0x3c   : > { %p1581_p0 = pneg %p1580_p13 }
  0x3e   : > { %p1588_p9 = pnand %p1587_p7, %p1581_p0 }
  0x40   : > { %1591 = shalt.err (!%p1588_p9)
}
  0x41   : > { %1416 = dma.hbm_to_vmem [thread:$0]  (!%p1831_p10), %s2265_s3, 2048, %s1835_s19, [#allocation7], %s2274_s28, %s2274_s28, %s1729_s11  }
  0x42   : > { %s1891_s17 = sadd.s32 1, %s1724_s10   ;;  %s37_s18 = sadd.s32 1, %s1720_s9 }
  0x43   : > { %s34_s20 = ssub.s32 %s1724_s10, %s1891_s17  ;;  %p44_p12 = scmp.ne.s32.totalorder %s1720_s9, %s1716_s30 }
  0x44   : > { %p35_p1 = scmp.eq.s32.totalorder %s34_s20, 0  ;;  %p45_p2 = scmp.eq.s32.totalorder %s1724_s10, 0 }
  0x45   : > { %p2279_p4 = scmp.eq.s32.totalorder %s1804_s6, 2  ;;  %p1430_p8 = scmp.lt.s32.totalorder %s1724_s10, 3 }
  0x46   : > { %s1907_s22 = scalar_select %p35_p1, %s1720_s9, %s37_s18  }
  0x47   : > { %p1901_p6 = por %p2279_p4, %p44_p12  ;;  %p46_p11 = por %p45_p2, %p44_p12 }
  0x48   : > { %s290_s23 = sand.u32 1, %s1720_s9   ;;  %s1153_s19 = sshll.u32 %s1724_s10, 11 }
  0x49   : > { %s1117_s24 = sshll.u32 %s290_s23, 7  ;;  %s1914_s16 = scalar_lea.hbm %s2262_s0, %s1153_s19 }
  0x4a   : > { %s294_s27 = scalar_lea.vmem [#allocation3], %s1117_s24  ;;  %p1918_p10 = pnand %p1430_p8, %p46_p11 }
  0x4b   : > { %s301_s15 = sshll.u32 %s294_s27, 4  ;;  %s1922_s20 = scalar_lea.sflag [#allocation4], %s290_s23  ;;  %s1916_s15 = int_to_ptr.vmem [resolvable:$true] %s301_s15 }
  0x4c   : > { %s1592_s28 = scalar_lea.hbm %s1914_s16, 2048  ;;  %p1594_p0 = pneg %p1918_p10 }
  0x4d   : > { %p1593_p13 = scmp.ne.s32.totalorder %s1914_s16, %s1592_s28  ;;  %s1597_s25 = scalar_lea.hbm %s2262_s0, 6144 }
  0x4e   : > { %p1598_p7 = scmp.lt.u32.totalorder %s1914_s16, %s2262_s0  ;;  %p1599_p9 = scmp.lt.u32.totalorder %s1597_s25, %s1592_s28 }
  0x4f   : > { %p1595_p3 = pnand %p1594_p0, %p1593_p13  ;;  %p1601_p1 = scmp.lt.u32.totalorder %s1592_s28, %s1914_s16 }
  0x50   : > { %p1600_p12 = por %p1599_p9, %p1598_p7 }
  0x51   : > { %p1596_p5 = pneg %p1595_p3 }
  0x52   : > { %p1602_p2 = por %p1601_p1, %p1600_p12 }
  0x54   : > { %p1603_p4 = pnand %p1602_p2, %p1596_p5 }
  0x56   : > { %1606 = shalt.err (!%p1603_p4)
}
  0x57   : > { %s1607_s23 = scalar_lea.vmem %s1916_s15, 2048  ;;  %s1730_s24 = smov [#allocation3]  }
  0x58   : > { %p1608_p8 = scmp.ne.s32.totalorder %s1916_s15, %s1607_s23  ;;  %s1612_s19 = sshll.u32 %s1730_s24, 4  ;;  %s1613_s19 = int_to_ptr.vmem [resolvable:$false] %s1612_s19 }
  0x59   : > { %s1614_s26 = scalar_lea.vmem %s1613_s19, 4096  ;;  %p1615_p3 = scmp.lt.s32.totalorder %s1916_s15, %s1613_s19 }
  0x5a   : > { %p1610_p11 = pnand %p1608_p8, %p1594_p0  ;;  %p1616_p7 = scmp.lt.s32.totalorder %s1614_s26, %s1607_s23 }
  0x5c   : > { %p1611_p13 = pneg %p1610_p11  ;;  %p1617_p9 = por %p1616_p7, %p1615_p3 }
  0x5e   : > { %p1618_p12 = pnand %p1617_p9, %p1611_p13 }
  0x60   : > { %1621 = shalt.err (!%p1618_p12)
}
  0x61   : > { %s2282_s28 = smov 128   ;;  %p2283_p0 = scmp.ne.s32.totalorder %s2277_s14, 0 }
  0x62   : > { %1420 = dma.hbm_to_vmem [thread:$0]  (!%p1918_p10), %s1914_s16, 2048, %s1916_s15, %s1922_s20, %s2282_s28, %s2282_s28, %s1729_s11  }
  0x63   : > { %313 = sbr.rel (%p2283_p0) target bundleno = 799 (0x31f), region = 48  ;;  %s1956_s25 = sand.u32 (!%p2283_p0), 1, %s1716_s30  }
  0x64   : > { %s1959_s27 = sshll.u32 (!%p2283_p0), %s1956_s25, 7  ;;  %s316_s18 = scalar_lea.sflag (!%p2283_p0), [#allocation4], %s1956_s25 }
  0x65   : > { %s1963_s23 = scalar_lea.vmem (!%p2283_p0), [#allocation3], %s1959_s27  ;;  %p2284_p5 = scmp.ne.s32.totalorder (!%p2283_p0), %s2275_s12, 0 }
  0x6a   : > { %1695 = dma.done.wait (%p2284_p5), %s316_s18, 2048  }
  0x6b   : > { %1697 = vsyncadd (%p2284_p5), %s316_s18, 4294965248  ;;  %p2285_p10 = scmp.eq.s32.totalorder %s1804_s6, 0 }
  0x6d   : > { %1699 = dma.done.wait (%p2285_p10), [#allocation7], 4096   ;;  %p2286_p1 = pmov %p2285_p10 }
  0x6e   : > { %v384_v0 = vld [vmem:[#allocation6] sm:$0xff]  ;;  %v385_v1 = vld [vmem:[#allocation6 + $0x8] sm:$0xff]  ;;  %v386_v2 = vld [vmem:[#allocation6 + $0x10] sm:$0xff]  ;;  %s2009_s24 = scalar_lea.vmem [#allocation9], %s1959_s27  ;;  %s1154_s19 = sshll.u32 %s1804_s6, 11 }
  0x6f   : > { %1701 = vsyncadd (%p2286_p1), [#allocation7], 4294963200  ;;  %v1332_v3 = vpack.c.bf16 %v385_v1, %v384_v0  ;;  %v387_v4 = vld [vmem:[#allocation6 + $0x18] sm:$0xff]  ;;  %v388_v6 = vld [vmem:[#allocation6 + $0x20] sm:$0xff]  ;;  %s972_s26 = sshll.u32 %s2009_s24, 4  ;;  %s954_s12 = scalar_lea.sflag [#allocation5], %s1956_s25  ;;  %s2126_s26 = int_to_ptr.vmem [resolvable:$true] %s972_s26 }
  0x70   : > { %v1336_v5 = vpack.c.bf16 %v387_v4, %v386_v2  ;;  %v389_v7 = vld [vmem:[#allocation6 + $0x28] sm:$0xff]  ;;  %v368_v9 = vld [vmem:[%s1963_s23] sm:$0xff]  ;;  %v390_v10 = vld [vmem:[#allocation6 + $0x30] sm:$0xff]  ;;  %s1622_s14 = scalar_lea.vmem %s2126_s26, 2048  ;;  %s1731_s11 = smov [#allocation9]  }
  0x71   : > { %1333 = vmatprep.subr.bf16.mxu0 %v1332_v3  ;;  %v1340_v8 = vpack.c.bf16 %v389_v7, %v388_v6  ;;  %v391_v11 = vld [vmem:[#allocation6 + $0x38] sm:$0xff]  ;;  %1252 = vmatprep.mubr.f32.mxu0 %v368_v9  ;;  %v392_v13 = vld [vmem:[#allocation6 + $0x40] sm:$0xff]  ;;  %v393_v14 = vld [vmem:[#allocation6 + $0x48] sm:$0xff]  ;;  %p1623_p2 = scmp.ne.s32.totalorder %s2126_s26, %s1622_s14  ;;  %s1626_s16 = sshll.u32 %s1731_s11, 4  ;;  %s1627_s16 = int_to_ptr.vmem [resolvable:$false] %s1626_s16 }
  0x72   : > { %1335 = vmatpush3.bf16.msra.mxu0 %v1332_v3  ;;  %v1344_v12 = vpack.c.bf16 %v391_v11, %v390_v10  ;;  %v568_v15 = vld [vmem:[#allocation8] sm:$0xff]  ;;  %v569_v16 = vld [vmem:[#allocation8 + $0x8] sm:$0xff]  ;;  %v570_v17 = vld [vmem:[#allocation8 + $0x10] sm:$0xff]  ;;  %v1348_v21 = vpack.c.bf16 %v393_v14, %v392_v13  ;;  %s1628_s15 = scalar_lea.vmem %s1627_s16, 4096  ;;  %p1629_p11 = scmp.lt.s32.totalorder %s2126_s26, %s1627_s16 }
  0x73   : > { %1337 = vmatprep.subr.bf16.mxu0 %v1336_v5  ;;  %v571_v18 = vld [vmem:[#allocation8 + $0x18] sm:$0xff]  ;;  %v1364_v19 = vpack.c.bf16 %v569_v16, %v568_v15  ;;  %v572_v22 = vld [vmem:[#allocation8 + $0x20] sm:$0xff]  ;;  %v573_v23 = vld [vmem:[#allocation8 + $0x28] sm:$0xff]  ;;  %p1624_p4 = pnand %p1623_p2, %p1901_p6  ;;  %p1630_p13 = scmp.lt.s32.totalorder %s1628_s15, %s1622_s14 }
  0x74   : > { %v1368_v20 = vpack.c.bf16 %v571_v18, %v570_v17  ;;  %v394_v24 = vld [vmem:[#allocation6 + $0x50] sm:$0xff]  ;;  %v395_v25 = vld [vmem:[#allocation6 + $0x58] sm:$0xff]  ;;  %v1372_v26 = vpack.c.bf16 %v573_v23, %v572_v22  ;;  %v396_v30 = vld [vmem:[#allocation6 + $0x60] sm:$0xff] }
  0x75   : > { %1365 = vmatprep.subr.bf16.mxu1 %v1364_v19  ;;  %v1352_v27 = vpack.c.bf16 %v395_v25, %v394_v24  ;;  %v574_v28 = vld [vmem:[#allocation8 + $0x30] sm:$0xff]  ;;  %v575_v29 = vld [vmem:[#allocation8 + $0x38] sm:$0xff]  ;;  %v397_v31 = vld [vmem:[#allocation6 + $0x68] sm:$0xff]  ;;  %p1625_p8 = pneg %p1624_p4  ;;  %p1631_p3 = por %p1630_p13, %p1629_p11 }
  0x76   : > { %1339 = vmatpush3.bf16.msra.mxu0 %v1336_v5  ;;  %1367 = vmatpush3.bf16.msra.mxu1 %v1364_v19  ;;  %v1376_v32 = vpack.c.bf16 %v575_v29, %v574_v28  ;;  %v1356_v33 = vpack.c.bf16 %v397_v31, %v396_v30  ;;  %v576_v34 = vld [vmem:[#allocation8 + $0x40] sm:$0xff]  ;;  %v577_v35 = vld [vmem:[#allocation8 + $0x48] sm:$0xff]  ;;  %v398_v36 = vld [vmem:[#allocation6 + $0x70] sm:$0xff] }
  0x77   : > { %1341 = vmatprep.subr.bf16.mxu0 %v1340_v8  ;;  %1369 = vmatprep.subr.bf16.mxu1 %v1368_v20  ;;  %v399_v37 = vld [vmem:[#allocation6 + $0x78] sm:$0xff]  ;;  %v1380_v38 = vpack.c.bf16 %v577_v35, %v576_v34  ;;  %v578_v40 = vld [vmem:[#allocation8 + $0x50] sm:$0xff]  ;;  %v580_v43 = vld [vmem:[#allocation8 + $0x60] sm:$0xff]  ;;  %p1632_p7 = pnand %p1631_p3, %p1625_p8 }
  0x78   : > { %v1360_v39 = vpack.c.bf16 %v399_v37, %v398_v36  ;;  %v579_v41 = vld [vmem:[#allocation8 + $0x58] sm:$0xff]  ;;  %v581_v44 = vld [vmem:[#allocation8 + $0x68] sm:$0xff]  ;;  %v370_v47 = vld [vmem:[%s1963_s23 + $0x10] sm:$0xff] }
  0x79   : > { %v1384_v42 = vpack.c.bf16 %v579_v41, %v578_v40  ;;  %v369_v45 = vld [vmem:[%s1963_s23 + $0x8] sm:$0xff]  ;;  %v1388_v46 = vpack.c.bf16 %v581_v44, %v580_v43  ;;  %v371_v48 = vld [vmem:[%s1963_s23 + $0x18] sm:$0xff]  ;;  %v372_v49 = vld [vmem:[%s1963_s23 + $0x20] sm:$0xff] }
  0x7a   : > { %1343 = vmatpush3.bf16.msra.mxu0 %v1340_v8  ;;  %1371 = vmatpush3.bf16.msra.mxu1 %v1368_v20  ;;  %v373_v50 = vld [vmem:[%s1963_s23 + $0x28] sm:$0xff]  ;;  %v374_v51 = vld [vmem:[%s1963_s23 + $0x30] sm:$0xff]  ;;  %v375_v52 = vld [vmem:[%s1963_s23 + $0x38] sm:$0xff] }
  0x7b   : > { %1345 = vmatprep.subr.bf16.mxu0 %v1344_v12  ;;  %1373 = vmatprep.subr.bf16.mxu1 %v1372_v26  ;;  %v376_v53 = vld [vmem:[%s1963_s23 + $0x40] sm:$0xff]  ;;  %v377_v54 = vld [vmem:[%s1963_s23 + $0x48] sm:$0xff]  ;;  %v378_v55 = vld [vmem:[%s1963_s23 + $0x50] sm:$0xff] }
  0x7c   : > { %v379_v56 = vld [vmem:[%s1963_s23 + $0x58] sm:$0xff]  ;;  %v380_v57 = vld [vmem:[%s1963_s23 + $0x60] sm:$0xff]  ;;  %v381_v58 = vld [vmem:[%s1963_s23 + $0x68] sm:$0xff] }
  0x7d   : > { %v382_v59 = vld [vmem:[%s1963_s23 + $0x70] sm:$0xff]  ;;  %v383_v60 = vld [vmem:[%s1963_s23 + $0x78] sm:$0xff]  ;;  %v1126_v0 = vld [vmem:[%s2264_s2] ss:$0 sm:$0xff]  ;;  %s2124_s23 = scalar_lea.hbm %s2269_s7, %s1154_s19 }
  0x7e   : > { %1347 = vmatpush3.bf16.msra.mxu0 %v1344_v12  ;;  %1375 = vmatpush3.bf16.msra.mxu1 %v1372_v26  ;;  %v582_v61 = vld [vmem:[#allocation8 + $0x70] sm:$0xff]  ;;  %v583_v62 = vld [vmem:[#allocation8 + $0x78] sm:$0xff] }
  0x7f   : > { %1349 = vmatprep.subr.bf16.mxu0 %v1348_v21  ;;  %1377 = vmatprep.subr.bf16.mxu1 %v1376_v32  ;;  %v1392_v63 = vpack.c.bf16 %v583_v62, %v582_v61 }
  0x82   : > { %1351 = vmatpush3.bf16.msra.mxu0 %v1348_v21  ;;  %1379 = vmatpush3.bf16.msra.mxu1 %v1376_v32 }
  0x83   : > { %1353 = vmatprep.subr.bf16.mxu0 %v1352_v27  ;;  %1381 = vmatprep.subr.bf16.mxu1 %v1380_v38 }
  0x86   : > { %1355 = vmatpush3.bf16.msra.mxu0 %v1352_v27  ;;  %1383 = vmatpush3.bf16.msra.mxu1 %v1380_v38 }
  0x87   : > { %1357 = vmatprep.subr.bf16.mxu0 %v1356_v33  ;;  %1385 = vmatprep.subr.bf16.mxu1 %v1384_v42 }
  0x8a   : > { %1359 = vmatpush3.bf16.msra.mxu0 %v1356_v33  ;;  %1387 = vmatpush3.bf16.msra.mxu1 %v1384_v42 }
  0x8b   : > { %1361 = vmatprep.subr.bf16.mxu0 %v1360_v39  ;;  %1389 = vmatprep.subr.bf16.mxu1 %v1388_v46 }
  0x8e   : > { %1363 = vmatpush3.bf16.msra.mxu0 %v1360_v39  ;;  %1391 = vmatpush3.bf16.msra.mxu1 %v1388_v46 }
  0x8f   : > { %1393 = vmatprep.subr.bf16.mxu1 %v1392_v63 }
  0x91   : > { %1253 = vmatmul.mubr.f32.vlgmr.msra.gmra.mrb[0].mxu0 %v369_v45 }
  0x92   : > { %1255 = vmatprep.mubr.f32.mxu0 %v370_v47  ;;  %1395 = vmatpush3.bf16.msra.mxu1 %v1392_v63 }
  0x95   : > { %1256 = vmatmul.mubr.f32.gmra.mrb[2].mxu0 %v371_v48 }
  0x96   : > { %1258 = vmatprep.mubr.f32.mxu0 %v372_v49  ;;  %v1995_v49 = vld [vmem:[%s2266_s4] ss:$0 sm:$0xff] }
  0x99   : > { %1259 = vmatmul.mubr.f32.gmra.mrb[4].mxu0 %v373_v50 }
  0x9a   : > { %1261 = vmatprep.mubr.f32.mxu0 %v374_v51  ;;  %v2000_v51 = vld [vmem:[%s2267_s5] ss:$0 sm:$0xff] }
  0x9d   : > { %1262 = vmatmul.mubr.f32.gmra.mrb[6].mxu0 %v375_v52 }
  0x9e   : > { %1264 = vmatprep.mubr.f32.mxu0 %v376_v53 }
  0xa1   : > { %1265 = vmatmul.mubr.f32.gmra.mrb[8].mxu0 %v377_v54 }
  0xa2   : > { %1267 = vmatprep.mubr.f32.mxu0 %v378_v55 }
  0xa5   : > { %1268 = vmatmul.mubr.f32.gmra.mrb[10].mxu0 %v379_v56 }
  0xa6   : > { %1270 = vmatprep.mubr.f32.mxu0 %v380_v57 }
  0xa9   : > { %1271 = vmatmul.mubr.f32.gmra.mrb[12].mxu0 %v381_v58 }
  0xaa   : > { %1273 = vmatprep.mubr.f32.mxu0 %v382_v59 }
  0xad   : > { %1274 = vmatmul.mubr.f32.gmra.mrb[14].mxu0 %v383_v60 }
 0x164   : > { %v1254_v1 = vpop.f32.mrb[0].mxu0 }
 0x165   : > { %v479_v2 = vadd.f32 %v1254_v1, %v1126_v0  ;;  %v473_v3 = vpop.f32.mrb[1].mxu0 }
 0x166   : > { %v474_v4 = vadd.f32 %v1126_v0, %v473_v3 }
 0x167   : > { %v553_v7 = vmax.f32 %v479_v2, 0.0 }
 0x168   : > { %v1257_v5 = vpop.f32.mrb[2].mxu0  ;;  %v552_v6 = vmax.f32 %v474_v4, 0.0 }
 0x169   : > { %v489_v8 = vadd.f32 %v1257_v5, %v1126_v0  ;;  %v483_v9 = vpop.f32.mrb[3].mxu0 }
 0x16a   : > { %v484_v10 = vadd.f32 %v1126_v0, %v483_v9  ;;  %1308 = vmatprep.mubr.f32.mxu1 %v552_v6 }
 0x16b   : > { %1309 = vmatmul.mubr.f32.vlgmr.msra.gmra.mrb[0].mxu1 %v553_v7  ;;  %v555_v13 = vmax.f32 %v489_v8, 0.0 }
 0x16c   : > { %v554_v11 = vmax.f32 %v484_v10, 0.0  ;;  %v1260_v12 = vpop.f32.mrb[4].mxu0 }
 0x16d   : > { %v499_v14 = vadd.f32 %v1260_v12, %v1126_v0  ;;  %v493_v15 = vpop.f32.mrb[5].mxu0 }
 0x16e   : > { %v494_v16 = vadd.f32 %v1126_v0, %v493_v15  ;;  %1311 = vmatprep.mubr.f32.mxu1 %v554_v11 }
 0x16f   : > { %v557_v17 = vmax.f32 %v499_v14, 0.0  ;;  %1312 = vmatmul.mubr.f32.gmra.mrb[2].mxu1 %v555_v13 }
 0x170   : > { %v556_v18 = vmax.f32 %v494_v16, 0.0  ;;  %v1263_v19 = vpop.f32.mrb[6].mxu0 }
 0x171   : > { %v509_v20 = vadd.f32 %v1263_v19, %v1126_v0  ;;  %v503_v21 = vpop.f32.mrb[7].mxu0 }
 0x172   : > { %v504_v22 = vadd.f32 %v1126_v0, %v503_v21  ;;  %1314 = vmatprep.mubr.f32.mxu1 %v556_v18 }
 0x173   : > { %v559_v23 = vmax.f32 %v509_v20, 0.0  ;;  %1315 = vmatmul.mubr.f32.gmra.mrb[4].mxu1 %v557_v17 }
 0x174   : > { %v558_v24 = vmax.f32 %v504_v22, 0.0  ;;  %v1266_v25 = vpop.f32.mrb[8].mxu0 }
 0x175   : > { %v519_v26 = vadd.f32 %v1266_v25, %v1126_v0  ;;  %v513_v27 = vpop.f32.mrb[9].mxu0 }
 0x176   : > { %v514_v28 = vadd.f32 %v1126_v0, %v513_v27  ;;  %1317 = vmatprep.mubr.f32.mxu1 %v558_v24 }
 0x177   : > { %v561_v29 = vmax.f32 %v519_v26, 0.0  ;;  %1318 = vmatmul.mubr.f32.gmra.mrb[6].mxu1 %v559_v23 }
 0x178   : > { %v560_v30 = vmax.f32 %v514_v28, 0.0  ;;  %v1269_v31 = vpop.f32.mrb[10].mxu0 }
 0x179   : > { %v529_v32 = vadd.f32 %v1269_v31, %v1126_v0  ;;  %v523_v33 = vpop.f32.mrb[11].mxu0 }
 0x17a   : > { %v524_v34 = vadd.f32 %v1126_v0, %v523_v33  ;;  %1320 = vmatprep.mubr.f32.mxu1 %v560_v30 }
 0x17b   : > { %v563_v35 = vmax.f32 %v529_v32, 0.0  ;;  %1321 = vmatmul.mubr.f32.gmra.mrb[8].mxu1 %v561_v29 }
 0x17c   : > { %v562_v36 = vmax.f32 %v524_v34, 0.0  ;;  %v1272_v37 = vpop.f32.mrb[12].mxu0 }
 0x17d   : > { %v539_v38 = vadd.f32 %v1272_v37, %v1126_v0  ;;  %v533_v39 = vpop.f32.mrb[13].mxu0 }
 0x17e   : > { %v534_v40 = vadd.f32 %v1126_v0, %v533_v39  ;;  %1323 = vmatprep.mubr.f32.mxu1 %v562_v36 }
 0x17f   : > { %v565_v41 = vmax.f32 %v539_v38, 0.0  ;;  %1324 = vmatmul.mubr.f32.gmra.mrb[10].mxu1 %v563_v35 }
 0x180   : > { %v564_v42 = vmax.f32 %v534_v40, 0.0  ;;  %v1275_v43 = vpop.f32.mrb[14].mxu0 }
 0x181   : > { %v549_v44 = vadd.f32 %v1275_v43, %v1126_v0  ;;  %v543_v45 = vpop.f32.mrb[15].mxu0 }
 0x182   : > { %v544_v46 = vadd.f32 %v1126_v0, %v543_v45  ;;  %1326 = vmatprep.mubr.f32.mxu1 %v564_v42 }
 0x183   : > { %v567_v47 = vmax.f32 %v549_v44, 0.0  ;;  %1327 = vmatmul.mubr.f32.gmra.mrb[12].mxu1 %v565_v41 }
 0x184   : > { %v566_v48 = vmax.f32 %v544_v46, 0.0 }
 0x186   : > { %1329 = vmatprep.mubr.f32.mxu1 %v566_v48 }
 0x187   : > { %1330 = vmatmul.mubr.f32.gmra.mrb[14].mxu1 %v567_v47 }
 0x23e   : > { %v1310_v50 = vpop.f32.mrb[0].mxu1 }
 0x23f   : > { %v2003_v52 = vadd.f32 %v1310_v50, %v1995_v49  ;;  %v657_v53 = vpop.f32.mrb[1].mxu1 }
 0x240   : > { %v2006_v54 = vadd.f32 %v1995_v49, %v657_v53 }
 0x241   : > { %922 = vst [vmem:[%s2009_s24 + $0x8] sm:$0xff] %v2003_v52  ;;  %v745_v55 = vmul.f32 %v2000_v51, %v2003_v52 }
 0x242   : > { %921 = vst [vmem:[%s2009_s24] sm:$0xff] %v2006_v54  ;;  %v1313_v56 = vpop.f32.mrb[2].mxu1  ;;  %v744_v61 = vmul.f32 %v2000_v51, %v2006_v54 }
 0x243   : > { %v2018_v57 = vadd.f32 %v1313_v56, %v1995_v49  ;;  %762 = vadd.xlane.f32.xlu0 %v745_v55  ;;  %v667_v58 = vpop.f32.mrb[3].mxu1 }
 0x244   : > { %v2021_v59 = vadd.f32 %v1995_v49, %v667_v58 }
 0x245   : > { %924 = vst [vmem:[%s2009_s24 + $0x18] sm:$0xff] %v2018_v57  ;;  %v747_v60 = vmul.f32 %v2000_v51, %v2018_v57 }
 0x246   : > { %923 = vst [vmem:[%s2009_s24 + $0x10] sm:$0xff] %v2021_v59  ;;  %v1316_v62 = vpop.f32.mrb[4].mxu1  ;;  %v746_v2 = vmul.f32 %v2000_v51, %v2021_v59 }
 0x247   : > { %v2032_v63 = vadd.f32 %v1316_v62, %v1995_v49  ;;  %766 = vadd.xlane.f32.xlu1 %v747_v60  ;;  %v677_v0 = vpop.f32.mrb[5].mxu1  ;;  %760 = vadd.xlane.f32.xlu0 %v744_v61 }
 0x248   : > { %v2035_v1 = vadd.f32 %v1995_v49, %v677_v0 }
 0x249   : > { %926 = vst [vmem:[%s2009_s24 + $0x28] sm:$0xff] %v2032_v63  ;;  %v749_v8 = vmul.f32 %v2000_v51, %v2032_v63 }
 0x24a   : > { %925 = vst [vmem:[%s2009_s24 + $0x20] sm:$0xff] %v2035_v1  ;;  %v1319_v3 = vpop.f32.mrb[6].mxu1  ;;  %v748_v4 = vmul.f32 %v2000_v51, %v2035_v1 }
 0x24b   : > { %v2046_v5 = vadd.f32 %v1319_v3, %v1995_v49  ;;  %v687_v6 = vpop.f32.mrb[7].mxu1  ;;  %764 = vadd.xlane.f32.xlu1 %v746_v2 }
 0x24c   : > { %v2049_v7 = vadd.f32 %v1995_v49, %v687_v6  ;;  %768 = vadd.xlane.f32.xlu0 %v748_v4 }
 0x24d   : > { %928 = vst [vmem:[%s2009_s24 + $0x38] sm:$0xff] %v2046_v5  ;;  %v751_v14 = vmul.f32 %v2000_v51, %v2046_v5 }
 0x24e   : > { %927 = vst [vmem:[%s2009_s24 + $0x30] sm:$0xff] %v2049_v7  ;;  %v1322_v9 = vpop.f32.mrb[8].mxu1  ;;  %v750_v10 = vmul.f32 %v2000_v51, %v2049_v7 }
 0x24f   : > { %v2060_v11 = vadd.f32 %v1322_v9, %v1995_v49  ;;  %v697_v12 = vpop.f32.mrb[9].mxu1  ;;  %770 = vadd.xlane.f32.xlu1 %v749_v8 }
 0x250   : > { %v2063_v13 = vadd.f32 %v1995_v49, %v697_v12  ;;  %772 = vadd.xlane.f32.xlu0 %v750_v10 }
 0x251   : > { %930 = vst [vmem:[%s2009_s24 + $0x48] sm:$0xff] %v2060_v11  ;;  %v753_v20 = vmul.f32 %v2000_v51, %v2060_v11 }
 0x252   : > { %929 = vst [vmem:[%s2009_s24 + $0x40] sm:$0xff] %v2063_v13  ;;  %v1325_v15 = vpop.f32.mrb[10].mxu1  ;;  %v752_v16 = vmul.f32 %v2000_v51, %v2063_v13 }
 0x253   : > { %v2074_v17 = vadd.f32 %v1325_v15, %v1995_v49  ;;  %v707_v18 = vpop.f32.mrb[11].mxu1  ;;  %774 = vadd.xlane.f32.xlu1 %v751_v14 }
 0x254   : > { %v2077_v19 = vadd.f32 %v1995_v49, %v707_v18  ;;  %776 = vadd.xlane.f32.xlu0 %v752_v16 }
 0x255   : > { %932 = vst [vmem:[%s2009_s24 + $0x58] sm:$0xff] %v2074_v17  ;;  %v755_v26 = vmul.f32 %v2000_v51, %v2074_v17 }
 0x256   : > { %931 = vst [vmem:[%s2009_s24 + $0x50] sm:$0xff] %v2077_v19  ;;  %v1328_v21 = vpop.f32.mrb[12].mxu1  ;;  %v754_v22 = vmul.f32 %v2000_v51, %v2077_v19 }
 0x257   : > { %v2088_v23 = vadd.f32 %v1328_v21, %v1995_v49  ;;  %v717_v24 = vpop.f32.mrb[13].mxu1  ;;  %778 = vadd.xlane.f32.xlu1 %v753_v20 }
 0x258   : > { %v2091_v25 = vadd.f32 %v1995_v49, %v717_v24  ;;  %780 = vadd.xlane.f32.xlu0 %v754_v22 }
 0x259   : > { %934 = vst [vmem:[%s2009_s24 + $0x68] sm:$0xff] %v2088_v23  ;;  %v757_v32 = vmul.f32 %v2000_v51, %v2088_v23 }
 0x25a   : > { %933 = vst [vmem:[%s2009_s24 + $0x60] sm:$0xff] %v2091_v25  ;;  %v1331_v27 = vpop.f32.mrb[14].mxu1  ;;  %v756_v28 = vmul.f32 %v2000_v51, %v2091_v25 }
 0x25b   : > { %v2102_v29 = vadd.f32 %v1331_v27, %v1995_v49  ;;  %v727_v30 = vpop.f32.mrb[15].mxu1  ;;  %782 = vadd.xlane.f32.xlu1 %v755_v26 }
 0x25c   : > { %v2105_v31 = vadd.f32 %v1995_v49, %v727_v30  ;;  %784 = vadd.xlane.f32.xlu0 %v756_v28 }
 0x25d   : > { %936 = vst [vmem:[%s2009_s24 + $0x78] sm:$0xff] %v2102_v29  ;;  %v759_v34 = vmul.f32 %v2000_v51, %v2102_v29 }
 0x25e   : > { %935 = vst [vmem:[%s2009_s24 + $0x70] sm:$0xff] %v2105_v31  ;;  %v758_v33 = vmul.f32 %v2000_v51, %v2105_v31 }
 0x25f   : > { %786 = vadd.xlane.f32.xlu1 %v757_v32 }
 0x260   : > { %788 = vadd.xlane.f32.xlu0 %v758_v33 }
 0x263   : > { %790 = vadd.xlane.f32.xlu1 %v759_v34 }
 0x264   : > { %1635 = shalt.err (!%p1632_p7)
}
 0x265   : > { %s1636_s20 = scalar_lea.hbm %s2124_s23, 2048  ;;  %s1640_s18 = scalar_lea.hbm %s2269_s7, 6144 }
 0x266   : > { %p1637_p9 = scmp.ne.s32.totalorder %s2124_s23, %s1636_s20  ;;  %p1641_p5 = scmp.lt.u32.totalorder %s2124_s23, %s2269_s7 }
 0x267   : > { %p1642_p10 = scmp.lt.u32.totalorder %s1640_s18, %s1636_s20  ;;  %p1644_p2 = scmp.lt.u32.totalorder %s1636_s20, %s2124_s23 }
 0x268   : > { %p1638_p12 = pnand %p1637_p9, %p1901_p6 }
 0x269   : > { %p1643_p1 = por %p1642_p10, %p1641_p5 }
 0x26a   : > { %p1639_p0 = pneg %p1638_p12 }
 0x26b   : > { %p1645_p4 = por %p1644_p2, %p1643_p1 }
 0x26d   : > { %p1646_p8 = pnand %p1645_p4, %p1639_p0 }
 0x26f   : > { %1649 = shalt.err (!%p1646_p8)
}
 0x270   : > { %s1732_s14 = smov 128   ;;  %s1733_s15 = smov 8  }
 0x271   : > { %1406 = dma.vmem_to_hbm [thread:$0]  (%p1901_p6), %s2126_s26, 2048, %s2124_s23, %s954_s12, %s1732_s14, %s1732_s14, %s1733_s15  }
 0x272   : > { %s737_s24 = sld [smem:[#allocation2]]  ;;  %s2174_s26 = scalar_lea.vmem [#allocation10], %s1959_s27 }
 0x273   : > { %s988_s27 = sshll.u32 %s2174_s26, 4  ;;  %s2213_s20 = scalar_lea.hbm %s2270_s8, %s1154_s19  ;;  %s2215_s27 = int_to_ptr.vmem [resolvable:$true] %s988_s27 }
 0x274   : > { %s959_s28 = scalar_lea.sflag [#allocation11], %s1956_s25  ;;  %s1650_s18 = scalar_lea.vmem %s2215_s27, 2048 }
 0x275   : > { %p1651_p11 = scmp.ne.s32.totalorder %s2215_s27, %s1650_s18  ;;  %s1734_s11 = smov [#allocation10]  }
 0x276   : > { %s1654_s16 = sshll.u32 %s1734_s11, 4  ;;  %s1655_s16 = int_to_ptr.vmem [resolvable:$false] %s1654_s16 }
 0x277   : > { %p1652_p13 = pnand %p1651_p11, %p1901_p6  ;;  %s1656_s6 = scalar_lea.vmem %s1655_s16, 4096 }
 0x278   : > { %v2155_v35 = vstv %s737_s24  ;;  %p1657_p7 = scmp.lt.s32.totalorder %s2215_s27, %s1655_s16  ;;  %p1658_p9 = scmp.lt.s32.totalorder %s1656_s6, %s1650_s18 }
 0x279   : > { %p1653_p3 = pneg %p1652_p13 }
 0x27a   : > { %p1659_p12 = por %p1658_p9, %p1657_p7 }
 0x27c   : > { %p1660_p0 = pnand %p1659_p12, %p1653_p3 }
 0x2d0   : > { %v763_v36 = vpop.xlane.xlu0 %762 }
 0x2d1   : > { %v794_v37 = vadd.f32 %v2155_v35, %v763_v36 }
 0x2d3   : > { %v1130_v38 = vmul.f32 -1.442695, %v794_v37 }
 0x2d4   : > { %v767_v39 = vpop.xlane.xlu1 %766  ;;  %v761_v40 = vpop.xlane.xlu0 %760 }
 0x2d5   : > { %1472 = vpow2.f32 %v1130_v38  ;;  %v796_v41 = vadd.f32 %v2155_v35, %v767_v39  ;;  %v793_v42 = vadd.f32 %v2155_v35, %v761_v40 }
 0x2d7   : > { %v1132_v43 = vmul.f32 -1.442695, %v796_v41  ;;  %v1129_v44 = vmul.f32 -1.442695, %v793_v42 }
 0x2d8   : > { %v765_v45 = vpop.xlane.xlu1 %764 }
 0x2d9   : > { %1474 = vpow2.f32 %v1132_v43  ;;  %v795_v46 = vadd.f32 %v2155_v35, %v765_v45  ;;  %v769_v47 = vpop.xlane.xlu0 %768 }
 0x2da   : > { %1476 = vpow2.f32 %v1129_v44  ;;  %v797_v48 = vadd.f32 %v2155_v35, %v769_v47 }
 0x2db   : > { %v1131_v49 = vmul.f32 -1.442695, %v795_v46 }
 0x2dc   : > { %v1133_v50 = vmul.f32 -1.442695, %v797_v48  ;;  %v771_v51 = vpop.xlane.xlu1 %770 }
 0x2dd   : > { %1478 = vpow2.f32 %v1131_v49  ;;  %v798_v53 = vadd.f32 %v2155_v35, %v771_v51  ;;  %v773_v55 = vpop.xlane.xlu0 %772 }
 0x2de   : > { %1480 = vpow2.f32 %v1133_v50  ;;  %v799_v56 = vadd.f32 %v2155_v35, %v773_v55 }
 0x2df   : > { %v1473_v58 = vpop.eup %1472  ;;  %v1134_v60 = vmul.f32 -1.442695, %v798_v53 }
 0x2e0   : > { %v858_v61 = vadd.f32 1.0, %v1473_v58  ;;  %v1135_v62 = vmul.f32 -1.442695, %v799_v56  ;;  %v775_v0 = vpop.xlane.xlu1 %774 }
 0x2e1   : > { %1482 = vpow2.f32 %v1134_v60  ;;  %v800_v2 = vadd.f32 %v2155_v35, %v775_v0  ;;  %v777_v3 = vpop.xlane.xlu0 %776 }
 0x2e2   : > { %1484 = vrcp.f32 %v858_v61  ;;  %v801_v4 = vadd.f32 %v2155_v35, %v777_v3 }
 0x2e3   : > { %v1475_v6 = vpop.eup %1474  ;;  %1486 = vpow2.f32 %v1135_v62  ;;  %v1136_v8 = vmul.f32 -1.442695, %v800_v2 }
 0x2e4   : > { %v1477_v9 = vpop.eup %1476  ;;  %v860_v10 = vadd.f32 1.0, %v1475_v6  ;;  %v1137_v12 = vmul.f32 -1.442695, %v801_v4  ;;  %v779_v14 = vpop.xlane.xlu1 %778 }
 0x2e5   : > { %v857_v15 = vadd.f32 1.0, %v1477_v9  ;;  %1488 = vpow2.f32 %v1136_v8  ;;  %v802_v16 = vadd.f32 %v2155_v35, %v779_v14  ;;  %v781_v18 = vpop.xlane.xlu0 %780 }
 0x2e6   : > { %1490 = vrcp.f32 %v860_v10  ;;  %v803_v20 = vadd.f32 %v2155_v35, %v781_v18 }
 0x2e7   : > { %v1479_v21 = vpop.eup %1478  ;;  %1492 = vrcp.f32 %v857_v15  ;;  %v1138_v22 = vmul.f32 -1.442695, %v802_v16 }
 0x2e8   : > { %v1481_v24 = vpop.eup %1480  ;;  %v859_v26 = vadd.f32 1.0, %v1479_v21  ;;  %1494 = vpow2.f32 %v1137_v12  ;;  %v1139_v27 = vmul.f32 -1.442695, %v803_v20  ;;  %v783_v28 = vpop.xlane.xlu1 %782 }
 0x2e9   : > { %v861_v30 = vadd.f32 1.0, %v1481_v24  ;;  %1496 = vpow2.f32 %v1138_v22  ;;  %v804_v32 = vadd.f32 %v2155_v35, %v783_v28  ;;  %v785_v33 = vpop.xlane.xlu0 %784 }
 0x2ea   : > { %1498 = vrcp.f32 %v859_v26  ;;  %v805_v34 = vadd.f32 %v2155_v35, %v785_v33 }
 0x2eb   : > { %v1483_v36 = vpop.eup %1482  ;;  %1500 = vrcp.f32 %v861_v30  ;;  %v1140_v37 = vmul.f32 -1.442695, %v804_v32 }
 0x2ec   : > { %v1485_v38 = vpop.eup %1484  ;;  %v862_v39 = vadd.f32 1.0, %v1483_v36  ;;  %1502 = vpow2.f32 %v1139_v27  ;;  %v1141_v40 = vmul.f32 -1.442695, %v805_v34  ;;  %v787_v41 = vpop.xlane.xlu1 %786 }
 0x2ed   : > { %v1487_v42 = vpop.eup %1486  ;;  %v906_v43 = vmul.f32 %v1485_v38, %v2003_v52  ;;  %1504 = vpow2.f32 %v1140_v37  ;;  %v806_v44 = vadd.f32 %v2155_v35, %v787_v41  ;;  %v789_v45 = vpop.xlane.xlu0 %788 }
 0x2ee   : > { %1506 = vrcp.f32 %v862_v39  ;;  %v863_v46 = vadd.f32 1.0, %v1487_v42  ;;  %v807_v47 = vadd.f32 %v2155_v35, %v789_v45 }
 0x2ef   : > { %v1489_v48 = vpop.eup %1488  ;;  %938 = vst [vmem:[%s2174_s26 + $0x8] sm:$0xff] %v906_v43  ;;  %1508 = vpow2.f32 %v1141_v40  ;;  %v1142_v49 = vmul.f32 -1.442695, %v806_v44 }
 0x2f0   : > { %v1491_v50 = vpop.eup %1490  ;;  %1510 = vrcp.f32 %v863_v46  ;;  %v864_v51 = vadd.f32 1.0, %v1489_v48  ;;  %v1143_v52 = vmul.f32 -1.442695, %v807_v47  ;;  %v791_v53 = vpop.xlane.xlu1 %790 }
 0x2f1   : > { %v1493_v55 = vpop.eup %1492  ;;  %v908_v56 = vmul.f32 %v1491_v50, %v2018_v57  ;;  %1512 = vpow2.f32 %v1142_v49  ;;  %v808_v58 = vadd.f32 %v2155_v35, %v791_v53 }
 0x2f2   : > { %v1495_v60 = vpop.eup %1494  ;;  %v905_v61 = vmul.f32 %v1493_v55, %v2006_v54  ;;  %1514 = vrcp.f32 %v864_v51 }
 0x2f3   : > { %v1497_v62 = vpop.eup %1496  ;;  %940 = vst [vmem:[%s2174_s26 + $0x18] sm:$0xff] %v908_v56  ;;  %v865_v0 = vadd.f32 1.0, %v1495_v60  ;;  %1516 = vpow2.f32 %v1143_v52  ;;  %v1144_v2 = vmul.f32 -1.442695, %v808_v58 }
 0x2f4   : > { %v1499_v3 = vpop.eup %1498  ;;  %937 = vst [vmem:[%s2174_s26] sm:$0xff] %v905_v61  ;;  %v866_v4 = vadd.f32 1.0, %v1497_v62 }
 0x2f5   : > { %v1501_v6 = vpop.eup %1500  ;;  %v907_v57 = vmul.f32 %v1499_v3, %v2021_v59  ;;  %1518 = vrcp.f32 %v865_v0 }
 0x2f6   : > { %v1503_v8 = vpop.eup %1502  ;;  %v909_v35 = vmul.f32 %v1501_v6, %v2035_v1  ;;  %1520 = vrcp.f32 %v866_v4 }
 0x2f7   : > { %v1505_v54 = vpop.eup %1504  ;;  %939 = vst [vmem:[%s2174_s26 + $0x10] sm:$0xff] %v907_v57  ;;  %v867_v9 = vadd.f32 1.0, %v1503_v8  ;;  %1522 = vpow2.f32 %v1144_v2 }
 0x2f8   : > { %v1507_v10 = vpop.eup %1506  ;;  %941 = vst [vmem:[%s2174_s26 + $0x20] sm:$0xff] %v909_v35  ;;  %v868_v12 = vadd.f32 1.0, %v1505_v54 }
 0x2f9   : > { %v1509_v14 = vpop.eup %1508  ;;  %v910_v15 = vmul.f32 %v1507_v10, %v2032_v63  ;;  %1524 = vrcp.f32 %v867_v9 }
 0x2fa   : > { %v1511_v59 = vpop.eup %1510  ;;  %1526 = vrcp.f32 %v868_v12  ;;  %v869_v16 = vadd.f32 1.0, %v1509_v14 }
 0x2fb   : > { %v1513_v18 = vpop.eup %1512  ;;  %942 = vst [vmem:[%s2174_s26 + $0x28] sm:$0xff] %v910_v15  ;;  %v911_v1 = vmul.f32 %v1511_v59, %v2049_v7 }
 0x2fc   : > { %v1515_v20 = vpop.eup %1514  ;;  %1528 = vrcp.f32 %v869_v16  ;;  %v870_v21 = vadd.f32 1.0, %v1513_v18 }
 0x2fd   : > { %v1517_v22 = vpop.eup %1516  ;;  %943 = vst [vmem:[%s2174_s26 + $0x30] sm:$0xff] %v911_v1  ;;  %v912_v24 = vmul.f32 %v1515_v20, %v2046_v5 }
 0x2fe   : > { %1530 = vrcp.f32 %v870_v21  ;;  %v871_v63 = vadd.f32 1.0, %v1517_v22 }
 0x2ff   : > { %v1519_v26 = vpop.eup %1518  ;;  %944 = vst [vmem:[%s2174_s26 + $0x38] sm:$0xff] %v912_v24 }
 0x300   : > { %v1521_v27 = vpop.eup %1520  ;;  %v913_v28 = vmul.f32 %v1519_v26, %v2063_v13  ;;  %1532 = vrcp.f32 %v871_v63 }
 0x301   : > { %v1523_v7 = vpop.eup %1522  ;;  %v914_v30 = vmul.f32 %v1521_v27, %v2060_v11 }
 0x302   : > { %945 = vst [vmem:[%s2174_s26 + $0x40] sm:$0xff] %v913_v28  ;;  %v872_v32 = vadd.f32 1.0, %v1523_v7 }
 0x303   : > { %v1525_v33 = vpop.eup %1524  ;;  %946 = vst [vmem:[%s2174_s26 + $0x48] sm:$0xff] %v914_v30 }
 0x304   : > { %v1527_v5 = vpop.eup %1526  ;;  %v915_v34 = vmul.f32 %v1525_v33, %v2077_v19  ;;  %1534 = vrcp.f32 %v872_v32 }
 0x305   : > { %v916_v36 = vmul.f32 %v1527_v5, %v2074_v17 }
 0x306   : > { %v1529_v13 = vpop.eup %1528  ;;  %947 = vst [vmem:[%s2174_s26 + $0x50] sm:$0xff] %v915_v34 }
 0x307   : > { %948 = vst [vmem:[%s2174_s26 + $0x58] sm:$0xff] %v916_v36  ;;  %v917_v11 = vmul.f32 %v1529_v13, %v2091_v25 }
 0x308   : > { %v1531_v37 = vpop.eup %1530 }
 0x309   : > { %949 = vst [vmem:[%s2174_s26 + $0x60] sm:$0xff] %v917_v11  ;;  %v918_v38 = vmul.f32 %v1531_v37, %v2088_v23 }
 0x30a   : > { %v1533_v39 = vpop.eup %1532 }
 0x30b   : > { %950 = vst [vmem:[%s2174_s26 + $0x68] sm:$0xff] %v918_v38  ;;  %v919_v19 = vmul.f32 %v1533_v39, %v2105_v31 }
 0x30d   : > { %951 = vst [vmem:[%s2174_s26 + $0x70] sm:$0xff] %v919_v19 }
 0x30e   : > { %v1535_v40 = vpop.eup %1534 }
 0x30f   : > { %v920_v17 = vmul.f32 %v1535_v40, %v2102_v29 }
 0x311   : > { %952 = vst [vmem:[%s2174_s26 + $0x78] sm:$0xff] %v920_v17 }
 0x312   : > { %1663 = shalt.err (!%p1660_p0)
}
 0x313   : > { %s1664_s19 = scalar_lea.hbm %s2213_s20, 2048  ;;  %s1668_s23 = scalar_lea.hbm %s2270_s8, 6144 }
 0x314   : > { %p1665_p5 = scmp.ne.s32.totalorder %s2213_s20, %s1664_s19  ;;  %p1669_p2 = scmp.lt.u32.totalorder %s2213_s20, %s2270_s8 }
 0x315   : > { %p1670_p4 = scmp.lt.u32.totalorder %s1668_s23, %s1664_s19  ;;  %p1672_p11 = scmp.lt.u32.totalorder %s1664_s19, %s2213_s20 }
 0x316   : > { %p1666_p10 = pnand %p1665_p5, %p1901_p6 }
 0x317   : > { %p1671_p8 = por %p1670_p4, %p1669_p2 }
 0x318   : > { %p1667_p1 = pneg %p1666_p10 }
 0x319   : > { %p1673_p13 = por %p1672_p11, %p1671_p8 }
 0x31b   : > { %p1674_p3 = pnand %p1673_p13, %p1667_p1 }
 0x31d   : > { %1677 = shalt.err (!%p1674_p3)
}
 0x31e   : > { %1407 = dma.vmem_to_hbm [thread:$0]  (%p1901_p6), %s2215_s27, 2048, %s2213_s20, %s959_s28, %s1732_s14, %s1732_s14, %s1733_s15  }
 0x31f PF: > { %p1433_p7 = scmp.ge.s32.totalorder %s1724_s10, 2  ;;  %s1003_s18 = sand.u32 1, %s1712_s29  }
 0x320   : > { %p2287_p9 = scmp.ne.s32.totalorder %s2276_s13, 0  ;;  %s1004_s16 = scalar_lea.sflag [#allocation5], %s1003_s18 }
 0x322   : > { %p1422_p12 = pnand %p1433_p7, %p2287_p9 }
 0x324   : > { %1703 = dma.done.wait (!%p1422_p12), %s1004_s16, 2048  }
 0x325   : > { %1705 = vsyncadd (!%p1422_p12), %s1004_s16, 4294965248  ;;  %s1013_s21 = scalar_lea.sflag [#allocation11], %s1003_s18 }
 0x326   : > { %1707 = dma.done.wait (!%p1422_p12), %s1013_s21, 2048  }
 0x327   : > { %1709 = vsyncadd (!%p1422_p12), %s1013_s21, 4294965248  ;;  %p27_p6 = scmp.ge.s32.totalorder %s1891_s17, 5   ;;  %s2288_s29 = smov %s1716_s30 }
 0x328   : > { %s2289_s30 = smov %s1720_s9  ;;  %s2290_s9 = smov %s1907_s22 }
 0x329   : > { %s2291_s10 = smov %s1891_s17  ;;  %29 = sbr.rel (!%p27_p6) target bundleno = 10 (0xa), region = 118 }
 0x330   :  { %1018 = vsyncpa [#allocation4], 1 }
 0x331   :  { %1020 = vsyncpa [#allocation4 + $0x1], 1 }
 0x332   :  { %1021 = vsyncpa [#allocation7], 1 }
 0x333   :  { %1022 = vsyncpa [#allocation5], 1 }
 0x334   :  { %1024 = vsyncpa [#allocation5 + $0x1], 1 }
 0x335   :  { %1025 = vsyncpa [#allocation11], 1 }
 0x336   :  { %1027 = vsyncpa [#allocation11 + $0x1], 1 }

</bundles_post_ra>
